<compile_context>
chip_gen: v7x
topology: tpu7x:2x2x1
jax: 0.10.0
libtpu: 0.0.40
codegen_flags: <defaults>
</compile_context>

<pallas_src>
import functools
from math import exp

import numpy as np
import jax
import jax.numpy as jnp
from jax.experimental import pallas as pl
from jax.experimental.pallas import tpu as pltpu

WINDOW_SIZE = 11
SIGMA = 1.5
PAD = WINDOW_SIZE // 2
C1 = 0.01 ** 2
C2 = 0.03 ** 2

# MXU operand dtype (f32 accumulation is always used).  bf16 is native on
# v6e/v7x MXUs and halves operand VMEM/DMA bytes; set to jnp.float32 if a
# tighter match to the f32 PyTorch reference is required.
_MXU_DTYPE = jnp.bfloat16

# Use the fused dense-conv-matrix kernel while K2D (double-buffered bf16,
# 2 * 2 * (H*W)^2 bytes) stays <= 4 MiB -> H*W <= 1024 (e.g. up to 32x32).
_MAX_FUSED_PIXELS = 1024


def _gaussian_1d(window_size, sigma):
    g = np.array(
        [exp(-(x - window_size // 2) ** 2 / float(2 * sigma ** 2)) for x in range(window_size)],
        dtype=np.float64,
    )
    return (g / g.sum()).astype(np.float32)


_G1D = _gaussian_1d(WINDOW_SIZE, SIGMA)


@functools.lru_cache(maxsize=None)
def _band_matrix(n):
    """n x n banded matrix B with B[i, j] = g[j - i + PAD] (symmetric).

    B @ a is exactly the zero-padded "same" 1-D Gaussian correlation along
    the leading axis of a (out-of-range taps have no column -> zero pad),
    matching F.conv2d(..., padding=window_size // 2) per axis.
    """
    m = np.zeros((n, n), dtype=np.float32)
    for i in range(n):
        for k in range(WINDOW_SIZE):
            j = i + k - PAD
            if 0 <= j < n:
                m[i, j] = _G1D[k]
    return m


@functools.lru_cache(maxsize=None)
def _conv_matrix(h, w):
    """(H*W, H*W) symmetric matrix of the zero-padded 11x11 Gaussian conv on
    row-major flattened images: conv2d(a).flatten() == a.flatten() @ K2D."""
    return np.kron(_band_matrix(h), _band_matrix(w))


def _round_up(x, m):
    return ((x + m - 1) // m) * m


def _choose_batch(nc, hw):
    """Images per grid step: multiple of 8, capped by a ~8 MiB VMEM budget
    (~100 live bytes per pixel per image incl. double-buffered inputs, bf16
    stack, f32 filtered outputs and elementwise temporaries)."""
    budget = 8 * 1024 * 1024
    cap = max(8, min(128, (budget // (100 * hw)) // 8 * 8))
    b = min(cap, _round_up(nc, 8))
    # v7x has two TensorCores: keep >= 2 parallel grid steps when there is
    # enough work (single-TC v5e/v6e are unaffected by the tiny extra step).
    if nc >= 16 and -(-nc // b) < 2:
        b = max(8, _round_up(-(-nc // 2), 8))
    return b


def _ssim_sums_kernel(b, logits_ref, gts_ref, k2d_ref, out_ref):
    """One grid step = B images: sigmoid + one fused MXU Gaussian conv of the
    five SSIM quantities + SSIM map + per-image partial sums (lane-dense)."""
    x = jax.nn.sigmoid(logits_ref[...].astype(jnp.float32))   # (B, HW) probs
    y = gts_ref[...].astype(jnp.float32)                      # (B, HW)

    # [x; y; x*x; y*y; x*y]  ->  (5B, HW), then ONE matmul against the
    # constant conv matrix (bf16 operands, f32 accumulate).
    stack = jnp.concatenate([x, y, x * x, y * y, x * y], axis=0)
    filt = jnp.dot(stack.astype(k2d_ref.dtype), k2d_ref[...],
                   preferred_element_type=jnp.float32)         # (5B, HW) f32

    mu1 = filt[0 * b:1 * b]
    mu2 = filt[1 * b:2 * b]
    e_xx = filt[2 * b:3 * b]
    e_yy = filt[3 * b:4 * b]
    e_xy = filt[4 * b:5 * b]

    mu1_sq = mu1 * mu1
    mu2_sq = mu2 * mu2
    mu1_mu2 = mu1 * mu2
    num = (2.0 * mu1_mu2 + C1) * (2.0 * (e_xy - mu1_mu2) + C2)
    den = (mu1_sq + mu2_sq + C1) * ((e_xx - mu1_sq) + (e_yy - mu2_sq) + C2)
    ssim_map = num * pl.reciprocal(den, approx=True)           # (B, HW) f32

    # Per-image partial sums, written as one lane-dense row per grid step.
    out_ref[0, 0, :] = jnp.sum(ssim_map, axis=1)


def _ssim_forward_xla(logits, gts, mean_on_loss):
    """Plain-XLA fallback for large images (identical math)."""
    # TODO(synk): replace with a block-banded separable Pallas kernel for
    # large H, W (the dense H*W x H*W conv matrix does not scale).
    n, c, h, w = logits.shape
    gh = jnp.asarray(_band_matrix(h))
    gw = jnp.asarray(_band_matrix(w))
    x = jax.nn.sigmoid(logits.astype(jnp.float32))
    y = gts.astype(jnp.float32)

    def conv(a):
        return jnp.einsum("hk,nckw,wv->nchv", gh, a, gw)

    mu1, mu2 = conv(x), conv(y)
    mu1_sq, mu2_sq, mu1_mu2 = mu1 * mu1, mu2 * mu2, mu1 * mu2
    sigma1_sq = conv(x * x) - mu1_sq
    sigma2_sq = conv(y * y) - mu2_sq
    sigma12 = conv(x * y) - mu1_mu2
    ssim_map = ((2.0 * mu1_mu2 + C1) * (2.0 * sigma12 + C2)) / (
        (mu1_sq + mu2_sq + C1) * (sigma1_sq + sigma2_sq + C2))
    score = jnp.mean(ssim_map, axis=(1, 2, 3))
    return jnp.mean(1.0 - score) if mean_on_loss else jnp.mean(score)


def ssim_forward(logits, gts, mean_on_loss=True):
    """logits: (N, C, H, W), gts: (N, C, H, W) (channel=1 in the module default)."""
    N, C, H, W = logits.shape
    assert gts.shape == (N, C, H, W)
    hw = H * W
    if hw > _MAX_FUSED_PIXELS:
        return _ssim_forward_xla(logits, gts, mean_on_loss)

    nc = N * C
    b = _choose_batch(nc, hw)
    g = -(-nc // b)
    nc_pad = g * b

    # Layout-preserving reshape (no data movement); inputs stay native dtype.
    x2 = logits.reshape(nc, hw)
    y2 = gts.reshape(nc, hw)
    if nc_pad != nc:
        # Cheap row pad so every grid step sees a full (B, HW) block; the
        # padded rows' sums are discarded below.
        x2 = jnp.pad(x2, ((0, nc_pad - nc), (0, 0)))
        y2 = jnp.pad(y2, ((0, nc_pad - nc), (0, 0)))

    k2d = jnp.asarray(_conv_matrix(H, W), dtype=_MXU_DTYPE)    # (HW, HW)

    sums = pl.pallas_call(
        functools.partial(_ssim_sums_kernel, b),
        out_shape=jax.ShapeDtypeStruct((g, 1, b), jnp.float32),
        grid=(g,),
        in_specs=[
            pl.BlockSpec((b, hw), lambda i: (i, 0)),
            pl.BlockSpec((b, hw), lambda i: (i, 0)),
            pl.BlockSpec((hw, hw), lambda i: (0, 0)),   # constant, fetched once
        ],
        out_specs=pl.BlockSpec((1, 1, b), lambda i: (i, 0, 0)),
        compiler_params=pltpu.CompilerParams(
            dimension_semantics=("parallel",),
            vmem_limit_bytes=32 * 1024 * 1024,
        ),
    )(x2, y2, k2d)

    # cal_ssim(): ssim_map.mean((1, 2, 3)) per sample.
    per_image = sums.reshape(g * b)[:nc].reshape(N, C)
    ssim_score = jnp.sum(per_image, axis=1) / float(C * H * W)

    # TODO(synk): `reduce_score` / `check_args` are not defined in the reference
    # source; we assume mean_on_loss=True means batch-mean of the loss
    # (1 - score) and mean_on_loss=False means batch-mean of the score.
    if mean_on_loss:
        return jnp.mean(1.0 - ssim_score)
    return jnp.mean(ssim_score)


if __name__ == "__main__":
    key = jax.random.PRNGKey(0)
    k1, k2 = jax.random.split(key)
    N, C, H, W = 2, 1, 16, 16  # channel=1 matches the module default
    logits = jax.random.normal(k1, (N, C, H, W), dtype=jnp.float32)
    gts = jax.random.uniform(k2, (N, C, H, W), dtype=jnp.float32)

    loss = ssim_forward(logits, gts, mean_on_loss=True)
    jax.block_until_ready(loss)
    print("KERNEL_OK")
</pallas_src>

<mosaic_0001>
module attributes {stable_mosaic.version = 11 : i64} {
  func.func @_ssim_sums_kernel(%arg0: i32, %arg1: memref<8x256xf32, #tpu.memory_space<vmem>>, %arg2: memref<8x256xf32, #tpu.memory_space<vmem>>, %arg3: memref<256x256xbf16, #tpu.memory_space<vmem>>, %arg4: memref<1x1x8xf32, #tpu.memory_space<vmem>>) attributes {dimension_semantics = [#tpu.dimension_semantics<parallel>], iteration_bounds = array<i64: 1>, scalar_prefetch = 0 : i64, scratch_operands = 0 : i64, tpu.core_type = #tpu.core_type<tc>, window_params = [{transform_indices = @transform_0, window_bounds = array<i64: 8, 256>}, {transform_indices = @transform_1, window_bounds = array<i64: 8, 256>}, {pipeline_mode = #tpu.pipeline_mode<synchronous>, transform_indices = @transform_2, window_bounds = array<i64: 256, 256>}, {transform_indices = @transform_3, window_bounds = array<i64: 1, 1, 8>}]} {
    %c0 = arith.constant 0 : index
    %c0_0 = arith.constant 0 : index
    %0 = vector.load %arg1[%c0, %c0_0] : memref<8x256xf32, #tpu.memory_space<vmem>>, vector<8x256xf32>
    %1 = arith.negf %0 : vector<8x256xf32>
    %2 = math.exp %1 : vector<8x256xf32>
    %cst = arith.constant 1.000000e+00 : f32
    %3 = vector.broadcast %cst : f32 to vector<8x256xf32>
    %4 = arith.addf %3, %2 : vector<8x256xf32>
    %5 = arith.divf %3, %4 : vector<8x256xf32>
    %c0_1 = arith.constant 0 : index
    %c0_2 = arith.constant 0 : index
    %6 = vector.load %arg2[%c0_1, %c0_2] : memref<8x256xf32, #tpu.memory_space<vmem>>, vector<8x256xf32>
    %7 = arith.mulf %5, %5 : vector<8x256xf32>
    %8 = arith.mulf %6, %6 : vector<8x256xf32>
    %9 = arith.mulf %5, %6 : vector<8x256xf32>
    %10 = tpu.concatenate %5, %6, %7, %8, %9 in 0 : vector<8x256xf32>, vector<8x256xf32>, vector<8x256xf32>, vector<8x256xf32>, vector<8x256xf32> -> vector<40x256xf32>
    %11 = arith.truncf %10 : vector<40x256xf32> to vector<40x256xbf16>
    %c0_3 = arith.constant 0 : index
    %c0_4 = arith.constant 0 : index
    %12 = vector.load %arg3[%c0_3, %c0_4] : memref<256x256xbf16, #tpu.memory_space<vmem>>, vector<256x256xbf16>
    %cst_5 = arith.constant dense<0.000000e+00> : vector<40x256xf32>
    %13 = tpu.matmul %11, %12, %cst_5 {dimension_numbers = #tpu.dot_dimension_numbers<[1], [0], [0], [1], [0, 0, 1, 1], [], []>} : vector<40x256xbf16>, vector<256x256xbf16>, vector<40x256xf32> -> vector<40x256xf32>
    %14 = vector.extract_strided_slice %13 {offsets = [0, 0], sizes = [8, 256], strides = [1, 1]} : vector<40x256xf32> to vector<8x256xf32>
    %15 = vector.extract_strided_slice %13 {offsets = [8, 0], sizes = [8, 256], strides = [1, 1]} : vector<40x256xf32> to vector<8x256xf32>
    %16 = vector.extract_strided_slice %13 {offsets = [16, 0], sizes = [8, 256], strides = [1, 1]} : vector<40x256xf32> to vector<8x256xf32>
    %17 = vector.extract_strided_slice %13 {offsets = [24, 0], sizes = [8, 256], strides = [1, 1]} : vector<40x256xf32> to vector<8x256xf32>
    %18 = vector.extract_strided_slice %13 {offsets = [32, 0], sizes = [8, 256], strides = [1, 1]} : vector<40x256xf32> to vector<8x256xf32>
    %19 = arith.mulf %14, %14 : vector<8x256xf32>
    %20 = arith.mulf %15, %15 : vector<8x256xf32>
    %21 = arith.mulf %14, %15 : vector<8x256xf32>
    %cst_6 = arith.constant 2.000000e+00 : f32
    %22 = vector.broadcast %cst_6 : f32 to vector<8x256xf32>
    %23 = arith.mulf %22, %21 : vector<8x256xf32>
    %cst_7 = arith.constant 9.99999974E-5 : f32
    %24 = vector.broadcast %cst_7 : f32 to vector<8x256xf32>
    %25 = arith.addf %23, %24 : vector<8x256xf32>
    %26 = arith.subf %18, %21 : vector<8x256xf32>
    %cst_8 = arith.constant 2.000000e+00 : f32
    %27 = vector.broadcast %cst_8 : f32 to vector<8x256xf32>
    %28 = arith.mulf %27, %26 : vector<8x256xf32>
    %cst_9 = arith.constant 8.99999984E-4 : f32
    %29 = vector.broadcast %cst_9 : f32 to vector<8x256xf32>
    %30 = arith.addf %28, %29 : vector<8x256xf32>
    %31 = arith.mulf %25, %30 : vector<8x256xf32>
    %32 = arith.addf %19, %20 : vector<8x256xf32>
    %cst_10 = arith.constant 9.99999974E-5 : f32
    %33 = vector.broadcast %cst_10 : f32 to vector<8x256xf32>
    %34 = arith.addf %32, %33 : vector<8x256xf32>
    %35 = arith.subf %16, %19 : vector<8x256xf32>
    %36 = arith.subf %17, %20 : vector<8x256xf32>
    %37 = arith.addf %35, %36 : vector<8x256xf32>
    %cst_11 = arith.constant 8.99999984E-4 : f32
    %38 = vector.broadcast %cst_11 : f32 to vector<8x256xf32>
    %39 = arith.addf %37, %38 : vector<8x256xf32>
    %40 = arith.mulf %34, %39 : vector<8x256xf32>
    %41 = tpu.reciprocal %40 {approx = true} : vector<8x256xf32> -> vector<8x256xf32>
    %42 = arith.mulf %31, %41 : vector<8x256xf32>
    %cst_12 = arith.constant dense<0.000000e+00> : vector<8xf32>
    %43 = vector.multi_reduction <add>, %42, %cst_12 [1] : vector<8x256xf32> to vector<8xf32>
    %c0_13 = arith.constant 0 : index
    %c0_14 = arith.constant 0 : index
    %c0_15 = arith.constant 0 : index
    %44 = vector.load %arg4[%c0_13, %c0_14, %c0_15] : memref<1x1x8xf32, #tpu.memory_space<vmem>>, vector<1x1x8xf32>
    %45 = vector.shape_cast %44 : vector<1x1x8xf32> to vector<8xf32>
    %46 = vector.shape_cast %43 : vector<8xf32> to vector<1x1x8xf32>
    tpu.vector_store %arg4[%c0_13, %c0_14, %c0_15], %46 {strides = array<i32>} : memref<1x1x8xf32, #tpu.memory_space<vmem>>, vector<1x1x8xf32>,
    return
  }
  func.func @transform_0(%arg0: i32) -> (i32, i32) {
    %c0_i32 = arith.constant 0 : i32
    %c0_i32_0 = arith.constant 0 : i32
    return %arg0, %c0_i32 : i32, i32
  }
  func.func @transform_1(%arg0: i32) -> (i32, i32) {
    %c0_i32 = arith.constant 0 : i32
    %c0_i32_0 = arith.constant 0 : i32
    return %arg0, %c0_i32 : i32, i32
  }
  func.func @transform_2(%arg0: i32) -> (i32, i32) {
    %c0_i32 = arith.constant 0 : i32
    %c0_i32_0 = arith.constant 0 : i32
    %c0_i32_1 = arith.constant 0 : i32
    return %c0_i32, %c0_i32_0 : i32, i32
  }
  func.func @transform_3(%arg0: i32) -> (i32, i32, i32) {
    %c0_i32 = arith.constant 0 : i32
    %c0_i32_0 = arith.constant 0 : i32
    %c0_i32_1 = arith.constant 0 : i32
    return %arg0, %c0_i32, %c0_i32_0 : i32, i32, i32
  }
}

</mosaic_0001>

<bundles_post_ra>
// kernel: tpu_custom_call.1
= control target key start
LH: loop header
LB: loop body
LE: loop exit
PB: predicated region body
PF: predicated region fallthrough
CT: control target
= control target key end

     0   :  { %8 = vsyncpa [#allocation3], 0  ;;  %s698_s0 = inlined_call_operand.hbm [shape: f32[8,256], index: 0, kind: input, shape index: {}]   ;;  %s699_s1 = inlined_call_operand.hbm [shape: f32[8,256], index: 1, kind: input, shape index: {}]   ;;  %s700_s2 = inlined_call_operand.hbm [shape: bf16[256,256], index: 2, kind: input, shape index: {}]   ;;  %s701_s3 = inlined_call_operand.hbm [shape: f32[1,1,8], index: 3, kind: output, shape index: {}]  }
   0x1   :  { %9 = vsyncpa [#allocation6], 0 }
   0x2   :  { %10 = vsyncpa [#allocation4], 0  ;;  %s624_s12 = smov [#allocation5]   ;;  %s625_s14 = smov [#allocation2]  }
   0x3   :  { %s27_s13 = sshll.u32 %s624_s12, 4  ;;  %s17_s15 = sshll.u32 %s625_s14, 4  ;;  %s28_s13 = int_to_ptr.vmem [resolvable:$true] %s27_s13  ;;  %s18_s15 = int_to_ptr.vmem [resolvable:$true] %s17_s15 }
   0x4   :  { %s530_s18 = scalar_lea.hbm %s699_s1, 256 }
   0x5   :  { %p531_p0 = scmp.ne.s32.totalorder %s699_s1, %s530_s18  ;;  %p534_p1 = scmp.lt.u32.totalorder %s530_s18, %s699_s1 }
   0x7   :  { %p536_p2 = pnand %p534_p1, %p531_p0 }
   0x9   :  { %539 = shalt.err (!%p536_p2)
}
   0xa   :  { %s540_s23 = scalar_lea.vmem %s28_s13, 256  ;;  %p545_p4 = scmp.lt.s32.totalorder %s28_s13, %s28_s13 }
   0xb   :  { %p541_p3 = scmp.ne.s32.totalorder %s28_s13, %s540_s23  ;;  %p546_p5 = scmp.lt.s32.totalorder %s540_s23, %s540_s23 }
   0xd   :  { %p547_p6 = por %p546_p5, %p545_p4 }
   0xf   :  { %p548_p7 = pnand %p547_p6, %p541_p3 }
  0x11   :  { %551 = shalt.err (!%p548_p7)
}
  0x12   :  { %30 = dma.hbm_to_vmem [thread:$0]  %s699_s1, 256, %s28_s13, [#allocation6]  }
  0x13   :  { %s552_s28 = scalar_lea.hbm %s698_s0, 256 }
  0x14   :  { %p553_p8 = scmp.ne.s32.totalorder %s698_s0, %s552_s28  ;;  %p556_p9 = scmp.lt.u32.totalorder %s552_s28, %s698_s0 }
  0x16   :  { %p558_p10 = pnand %p556_p9, %p553_p8 }
  0x18   :  { %561 = shalt.err (!%p558_p10)
}
  0x19   :  { %s562_s6 = scalar_lea.vmem %s18_s15, 256  ;;  %p567_p12 = scmp.lt.s32.totalorder %s18_s15, %s18_s15 }
  0x1a   :  { %p563_p11 = scmp.ne.s32.totalorder %s18_s15, %s562_s6  ;;  %p568_p13 = scmp.lt.s32.totalorder %s562_s6, %s562_s6 }
  0x1c   :  { %p569_p0 = por %p568_p13, %p567_p12 }
  0x1e   :  { %p570_p1 = pnand %p569_p0, %p563_p11 }
  0x20   :  { %573 = shalt.err (!%p570_p1)
}
  0x21   :  { %20 = dma.hbm_to_vmem [thread:$0]  %s698_s0, 256, %s18_s15, [#allocation3]  }
  0x22   :  { %s626_s8 = smov [#allocation7]   ;;  %s574_s12 = scalar_lea.hbm %s700_s2, 4096 }
  0x23   :  { %s36_s9 = sshll.u32 %s626_s8, 4  ;;  %p575_p2 = scmp.ne.s32.totalorder %s700_s2, %s574_s12  ;;  %s37_s9 = int_to_ptr.vmem [resolvable:$true] %s36_s9 }
  0x24   :  { %p578_p3 = scmp.lt.u32.totalorder %s574_s12, %s700_s2 }
  0x26   :  { %p580_p4 = pnand %p578_p3, %p575_p2 }
  0x28   :  { %583 = shalt.err (!%p580_p4)
}
  0x29   :  { %s584_s18 = scalar_lea.vmem %s37_s9, 4096  ;;  %p589_p6 = scmp.lt.s32.totalorder %s37_s9, %s37_s9 }
  0x2a   :  { %p585_p5 = scmp.ne.s32.totalorder %s37_s9, %s584_s18  ;;  %p590_p7 = scmp.lt.s32.totalorder %s584_s18, %s584_s18 }
  0x2c   :  { %p591_p8 = por %p590_p7, %p589_p6 }
  0x2e   :  { %p592_p9 = pnand %p591_p8, %p585_p5 }
  0x30   :  { %595 = shalt.err (!%p592_p9)
}
  0x31   :  { %s627_s0 = smov 128   ;;  %s628_s15 = smov 8  }
  0x32   :  { %42 = dma.hbm_to_vmem [thread:$0]  %s700_s2, 4096, %s37_s9, [#allocation6], %s627_s0, %s627_s0, %s628_s15  }
  0x33   :  { %618 = dma.done.wait [#allocation3], 256  }
  0x34   :  { %619 = vsyncadd [#allocation3], 4294967040 }
  0x35   :  { %620 = dma.done.wait [#allocation6], 4352  }
  0x36   :  { %621 = vsyncadd [#allocation6], 4294962944  ;;  %v470_v0 = vld [vmem:[#allocation7 + $0x4] ss:$8 sps:$4 sm:$0xff]   ;;  %v472_v1 = vld [vmem:[#allocation7] ss:$8 sps:$4 sm:$0xff]  }
  0x37   :  { %272 = vmatprep.subr.bf16.mxu0 %v470_v0  ;;  %432 = vmatprep.subr.bf16.mxu1 %v470_v0  ;;  %v473_v2 = vld [vmem:[#allocation7 + $0x14] ss:$8 sps:$4 sm:$0xff]   ;;  %v475_v3 = vld [vmem:[#allocation7 + $0x10] ss:$8 sps:$4 sm:$0xff]   ;;  %v476_v4 = vld [vmem:[#allocation7 + $0x24] ss:$8 sps:$4 sm:$0xff]  }
  0x38   :  { %273 = vmatpush1.bf16.msra.mxu0 %v472_v1  ;;  %448 = vmatpush1.bf16.msra.mxu1 %v472_v1  ;;  %v478_v5 = vld [vmem:[#allocation7 + $0x20] ss:$8 sps:$4 sm:$0xff]   ;;  %v479_v6 = vld [vmem:[#allocation7 + $0x34] ss:$8 sps:$4 sm:$0xff]   ;;  %v481_v7 = vld [vmem:[#allocation7 + $0x30] ss:$8 sps:$4 sm:$0xff]  }
  0x39   :  { %274 = vmatprep.subr.bf16.mxu0 %v473_v2  ;;  %433 = vmatprep.subr.bf16.mxu1 %v473_v2  ;;  %v482_v8 = vld [vmem:[#allocation7 + $0x44] ss:$8 sps:$4 sm:$0xff]   ;;  %v484_v9 = vld [vmem:[#allocation7 + $0x40] ss:$8 sps:$4 sm:$0xff]   ;;  %v485_v10 = vld [vmem:[#allocation7 + $0x54] ss:$8 sps:$4 sm:$0xff]  }
  0x3a   :  { %v487_v11 = vld [vmem:[#allocation7 + $0x50] ss:$8 sps:$4 sm:$0xff]   ;;  %v488_v12 = vld [vmem:[#allocation7 + $0x64] ss:$8 sps:$4 sm:$0xff]   ;;  %v490_v16 = vld [vmem:[#allocation7 + $0x60] ss:$8 sps:$4 sm:$0xff]  }
  0x3b   :  { %v53_v13 = vld [vmem:[#allocation2 + $0x8] sm:$0xff]  ;;  %v52_v15 = vld [vmem:[#allocation2] sm:$0xff]  ;;  %v491_v17 = vld [vmem:[#allocation7 + $0x74] ss:$8 sps:$4 sm:$0xff]   ;;  %s629_s2 = smov [#allocation8]   ;;  %vm380_vm0 = vcmask 57344  }
  0x3c   :  { %275 = vmatpush1.bf16.msra.mxu0 %v475_v3  ;;  %449 = vmatpush1.bf16.msra.mxu1 %v475_v3  ;;  %v399_v14 = vmul.f32 -1.442695, %v53_v13  ;;  %v398_v18 = vmul.f32 -1.442695, %v52_v15  ;;  %v493_v19 = vld [vmem:[#allocation7 + $0x70] ss:$8 sps:$4 sm:$0xff]  }
  0x3d   :  { %276 = vmatprep.subr.bf16.mxu0 %v476_v4  ;;  %434 = vmatprep.subr.bf16.mxu1 %v476_v4  ;;  %v494_v20 = vld [vmem:[#allocation7 + $0x84] ss:$8 sps:$4 sm:$0xff]   ;;  %v496_v21 = vld [vmem:[#allocation7 + $0x80] ss:$8 sps:$4 sm:$0xff]   ;;  %v497_v22 = vld [vmem:[#allocation7 + $0x94] ss:$8 sps:$4 sm:$0xff]  }
  0x3e   :  { %518 = vpow2.f32 %v399_v14  ;;  %v499_v24 = vld [vmem:[#allocation7 + $0x90] ss:$8 sps:$4 sm:$0xff]   ;;  %v500_v26 = vld [vmem:[#allocation7 + $0xa4] ss:$8 sps:$4 sm:$0xff]   ;;  %v502_v28 = vld [vmem:[#allocation7 + $0xa0] ss:$8 sps:$4 sm:$0xff]  }
  0x3f   :  { %520 = vpow2.f32 %v398_v18  ;;  %v503_v29 = vld [vmem:[#allocation7 + $0xb4] ss:$8 sps:$4 sm:$0xff]   ;;  %v505_v31 = vld [vmem:[#allocation7 + $0xb0] ss:$8 sps:$4 sm:$0xff]   ;;  %v506_v33 = vld [vmem:[#allocation7 + $0xc4] ss:$8 sps:$4 sm:$0xff]  }
  0x40   :  { %277 = vmatpush1.bf16.msra.mxu0 %v478_v5  ;;  %450 = vmatpush1.bf16.msra.mxu1 %v478_v5  ;;  %v67_v32 = vld [vmem:[#allocation5 + $0x8] sm:$0xff]  ;;  %v508_v36 = vld [vmem:[#allocation7 + $0xc0] ss:$8 sps:$4 sm:$0xff]   ;;  %v512_v42 = vld [vmem:[#allocation7 + $0xe4] ss:$8 sps:$4 sm:$0xff]   ;;  %s388_s21 = sshll.u32 %s629_s2, 4  ;;  %s389_s21 = int_to_ptr.vmem [resolvable:$true] %s388_s21 }
  0x41   :  { %278 = vmatprep.subr.bf16.mxu0 %v479_v6  ;;  %435 = vmatprep.subr.bf16.mxu1 %v479_v6  ;;  %v71_v34 = vmul.f32 %v67_v32, %v67_v32  ;;  %v509_v37 = vld [vmem:[#allocation7 + $0xd4] ss:$8 sps:$4 sm:$0xff]   ;;  %v511_v41 = vld [vmem:[#allocation7 + $0xd0] ss:$8 sps:$4 sm:$0xff]   ;;  %v514_v44 = vld [vmem:[#allocation7 + $0xe0] ss:$8 sps:$4 sm:$0xff]   ;;  %p601_p11 = scmp.lt.s32.totalorder %s389_s21, %s389_s21 }
  0x42   :  { %v66_v45 = vld [vmem:[#allocation5] sm:$0xff]  ;;  %s596_s22 = scalar_lea.vmem %s389_s21, 16  ;;  %s600_s23 = scalar_lea.vmem %s389_s21, 32 }
  0x43   :  { %v515_v46 = vld [vmem:[#allocation7 + $0xf4] ss:$8 sps:$4 sm:$0xff]   ;;  %v70_v48 = vmul.f32 %v66_v45, %v66_v45  ;;  %v517_v49 = vld [vmem:[#allocation7 + $0xf0] ss:$8 sps:$4 sm:$0xff]   ;;  %p597_p10 = scmp.ne.s32.totalorder %s389_s21, %s596_s22  ;;  %p602_p12 = scmp.lt.s32.totalorder %s600_s23, %s596_s22 }
  0x44   :  { %279 = vmatpush1.bf16.msra.mxu0 %v481_v7  ;;  %451 = vmatpush1.bf16.msra.mxu1 %v481_v7 }
  0x45   :  { %280 = vmatprep.subr.bf16.mxu0 %v482_v8  ;;  %436 = vmatprep.subr.bf16.mxu1 %v482_v8  ;;  %p603_p13 = por %p602_p12, %p601_p11 }
  0x47   :  { %p604_p0 = pnand %p603_p13, %p597_p10 }
  0x48   :  { %281 = vmatpush1.bf16.msra.mxu0 %v484_v9  ;;  %452 = vmatpush1.bf16.msra.mxu1 %v484_v9  ;;  %v519_v23 = vpop.eup %518 }
  0x49   :  { %282 = vmatprep.subr.bf16.mxu0 %v485_v10  ;;  %437 = vmatprep.subr.bf16.mxu1 %v485_v10  ;;  %v61_v25 = vadd.f32 1.0, %v519_v23  ;;  %v521_v27 = vpop.eup %520 }
  0x4a   :  { %v60_v30 = vadd.f32 1.0, %v521_v27 }
  0x4b   :  { %522 = vrcp.f32 %v61_v25 }
  0x4c   :  { %283 = vmatpush1.bf16.msra.mxu0 %v487_v11  ;;  %453 = vmatpush1.bf16.msra.mxu1 %v487_v11  ;;  %524 = vrcp.f32 %v60_v30 }
  0x4d   :  { %284 = vmatprep.subr.bf16.mxu0 %v488_v12  ;;  %438 = vmatprep.subr.bf16.mxu1 %v488_v12 }
  0x50   :  { %285 = vmatpush1.bf16.msra.mxu0 %v490_v16  ;;  %454 = vmatpush1.bf16.msra.mxu1 %v490_v16 }
  0x51   :  { %286 = vmatprep.subr.bf16.mxu0 %v491_v17  ;;  %439 = vmatprep.subr.bf16.mxu1 %v491_v17 }
  0x54   :  { %287 = vmatpush1.bf16.msra.mxu0 %v493_v19  ;;  %455 = vmatpush1.bf16.msra.mxu1 %v493_v19 }
  0x55   :  { %288 = vmatprep.subr.bf16.mxu0 %v494_v20  ;;  %440 = vmatprep.subr.bf16.mxu1 %v494_v20  ;;  %v523_v35 = vpop.eup %522 }
  0x56   :  { %v75_v38 = vpack.c.bf16 %v67_v32, %v523_v35  ;;  %v69_v39 = vmul.f32 %v523_v35, %v523_v35  ;;  %v525_v43 = vpop.eup %524  ;;  %v73_v50 = vmul.f32 %v523_v35, %v67_v32 }
  0x57   :  { %v68_v47 = vmul.f32 %v525_v43, %v525_v43  ;;  %v74_v51 = vpack.c.bf16 %v66_v45, %v525_v43  ;;  %v72_v54 = vmul.f32 %v525_v43, %v66_v45 }
  0x58   :  { %289 = vmatpush1.bf16.msra.mxu0 %v496_v21  ;;  %456 = vmatpush1.bf16.msra.mxu1 %v496_v21  ;;  %v77_v40 = vpack.c.bf16 %v71_v34, %v69_v39  ;;  %v79_v53 = vpack.c.bf16 %v73_v50, %v73_v50 }
  0x59   :  { %290 = vmatprep.subr.bf16.mxu0 %v497_v22  ;;  %441 = vmatprep.subr.bf16.mxu1 %v497_v22  ;;  %v76_v52 = vpack.c.bf16 %v70_v48, %v68_v47  ;;  %v78_v55 = vpack.c.bf16 %v72_v54, %v72_v54 }
  0x5a   :  { %304 = vmatprep.mubr.bf16.mxu0 %v75_v38  ;;  %314 = vmatprep.mubr.bf16.mxu1 %v77_v40 }
  0x5c   :  { %291 = vmatpush1.bf16.msra.mxu0 %v499_v24  ;;  %457 = vmatpush1.bf16.msra.mxu1 %v499_v24 }
  0x5d   :  { %292 = vmatprep.subr.bf16.mxu0 %v500_v26  ;;  %442 = vmatprep.subr.bf16.mxu1 %v500_v26 }
  0x60   :  { %293 = vmatpush1.bf16.msra.mxu0 %v502_v28  ;;  %458 = vmatpush1.bf16.msra.mxu1 %v502_v28 }
  0x61   :  { %294 = vmatprep.subr.bf16.mxu0 %v503_v29  ;;  %443 = vmatprep.subr.bf16.mxu1 %v503_v29 }
  0x64   :  { %295 = vmatpush1.bf16.msra.mxu0 %v505_v31  ;;  %459 = vmatpush1.bf16.msra.mxu1 %v505_v31 }
  0x65   :  { %296 = vmatprep.subr.bf16.mxu0 %v506_v33  ;;  %444 = vmatprep.subr.bf16.mxu1 %v506_v33 }
  0x68   :  { %297 = vmatpush1.bf16.msra.mxu0 %v508_v36  ;;  %460 = vmatpush1.bf16.msra.mxu1 %v508_v36 }
  0x69   :  { %298 = vmatprep.subr.bf16.mxu0 %v509_v37  ;;  %445 = vmatprep.subr.bf16.mxu1 %v509_v37 }
  0x6c   :  { %299 = vmatpush1.bf16.msra.mxu0 %v511_v41  ;;  %461 = vmatpush1.bf16.msra.mxu1 %v511_v41  ;;  %v373_v41 = vlaneseq }
  0x6d   :  { %300 = vmatprep.subr.bf16.mxu0 %v512_v42  ;;  %446 = vmatprep.subr.bf16.mxu1 %v512_v42 }
  0x6e   :  { %v374_v42 = vand.u32 127, %v373_v41  ;;  %v376_v43 = vshrl.u32 %v373_v41, 7 }
  0x70   :  { %301 = vmatpush1.bf16.msra.mxu0 %v514_v44  ;;  %462 = vmatpush1.bf16.msra.mxu1 %v514_v44  ;;  %v377_v44 = vsub.s32 %v374_v42, %v376_v43 }
  0x71   :  { %302 = vmatprep.subr.bf16.mxu0 %v515_v46  ;;  %447 = vmatprep.subr.bf16.mxu1 %v515_v46 }
  0x74   :  { %303 = vmatpush1.bf16.msra.mxu0 %v517_v49  ;;  %463 = vmatpush1.bf16.msra.mxu1 %v517_v49 }
  0x77   :  { %305 = vmatmul.mubr.bf16.vlgmr.msra.gmra.mrb[0].mxu0 %v74_v51  ;;  %315 = vmatmul.mubr.bf16.vlgmr.msra.gmra.mrb[0].mxu1 %v76_v52 }
  0x78   :  { %324 = vmatprep.mubr.bf16.mxu1 %v79_v53 }
  0x7f   :  { %325 = vmatmul.mubr.bf16.gmra.mrb[4].mxu1 %v78_v55 }
 0x14a   :  { %v306_v56 = vpop.f32.mrb[0].mxu0  ;;  %v316_v57 = vpop.f32.mrb[0].mxu1 }
 0x14b   :  { %v333_v58 = vmul.f32 %v306_v56, %v306_v56  ;;  %v308_v59 = vpop.f32.mrb[1].mxu0  ;;  %v318_v60 = vpop.f32.mrb[1].mxu1 }
 0x14c   :  { %v334_v61 = vmul.f32 %v308_v59, %v308_v59  ;;  %v310_v62 = vpop.f32.mrb[2].mxu0  ;;  %v320_v63 = vpop.f32.mrb[2].mxu1 }
 0x14d   :  { %v355_v0 = vsub.f32 %v316_v57, %v333_v58  ;;  %v335_v1 = vmul.f32 %v310_v62, %v310_v62  ;;  %v337_v2 = vmul.f32 %v310_v62, %v306_v56  ;;  %v312_v3 = vpop.f32.mrb[3].mxu0  ;;  %v322_v4 = vpop.f32.mrb[3].mxu1 }
 0x14e   :  { %v356_v5 = vsub.f32 %v318_v60, %v334_v61  ;;  %v336_v6 = vmul.f32 %v312_v3, %v312_v3  ;;  %v338_v7 = vmul.f32 %v312_v3, %v308_v59 }
 0x14f   :  { %v351_v8 = vadd.f32 %v335_v1, %v333_v58  ;;  %v357_v9 = vsub.f32 %v320_v63, %v335_v1  ;;  %v339_v15 = vmul.f32 2.0, %v337_v2 }
 0x150   :  { %v352_v10 = vadd.f32 %v336_v6, %v334_v61  ;;  %v358_v11 = vsub.f32 %v322_v4, %v336_v6  ;;  %v340_v20 = vmul.f32 2.0, %v338_v7 }
 0x151   :  { %v359_v12 = vadd.f32 %v357_v9, %v355_v0  ;;  %v353_v16 = vadd.f32 0.0001, %v351_v8  ;;  %v341_v30 = vadd.f32 0.0001, %v339_v15 }
 0x152   :  { %v360_v13 = vadd.f32 %v358_v11, %v356_v5  ;;  %v326_v14 = vpop.f32.mrb[4].mxu1  ;;  %v354_v21 = vadd.f32 0.0001, %v352_v10  ;;  %v342_v32 = vadd.f32 0.0001, %v340_v20 }
 0x153   :  { %v361_v17 = vadd.f32 0.0009, %v359_v12  ;;  %v343_v18 = vsub.f32 %v326_v14, %v337_v2  ;;  %v328_v19 = vpop.f32.mrb[5].mxu1 }
 0x154   :  { %v362_v22 = vadd.f32 0.0009, %v360_v13  ;;  %v344_v23 = vsub.f32 %v328_v19, %v338_v7  ;;  %v330_v24 = vpop.f32.mrb[6].mxu1 }
 0x155   :  { %v363_v25 = vmul.f32 %v361_v17, %v353_v16  ;;  %v345_v26 = vmul.f32 2.0, %v343_v18  ;;  %v331_v27 = vpop.f32.mrb[7].mxu1 }
 0x156   :  { %v364_v28 = vmul.f32 %v362_v22, %v354_v21  ;;  %v346_v29 = vmul.f32 2.0, %v344_v23 }
 0x157   :  { %526 = vrcp.f32 %v363_v25  ;;  %v347_v31 = vadd.f32 0.0009, %v345_v26 }
 0x158   :  { %528 = vrcp.f32 %v364_v28  ;;  %v348_v33 = vadd.f32 0.0009, %v346_v29 }
 0x159   :  { %v349_v34 = vmul.f32 %v347_v31, %v341_v30 }
 0x15a   :  { %v350_v35 = vmul.f32 %v348_v33, %v342_v32 }
 0x161   :  { %v527_v36 = vpop.eup %526 }
 0x162   :  { %v529_v37 = vpop.eup %528  ;;  %v367_v38 = vmul.f32 %v527_v36, %v349_v34 }
 0x163   :  { %v368_v39 = vmul.f32 %v529_v37, %v350_v35 }
 0x165   :  { %v369_v40 = vadd.f32 %v368_v39, %v367_v38 }
 0x167   :  { %370 = vadd.xlane.f32.xlu0 %v369_v40 }
 0x1f4   :  { %v371_v45 = vpop.xlane.xlu0 %370 }
 0x1f5   :  { %v378_v46 = vrot.slane %v371_v45, %v377_v44 }
 0x1f7   :  { %381 = vst.msk [vmem:[#allocation8] sm:$0x1] %vm380_vm0, %v378_v46 }
 0x1f8   :  { %607 = shalt.err (!%p604_p0)
}
 0x1f9   :  { %s608_s26 = scalar_lea.hbm %s701_s3, 16 }
 0x1fa   :  { %p609_p1 = scmp.ne.s32.totalorder %s701_s3, %s608_s26  ;;  %p612_p2 = scmp.lt.u32.totalorder %s608_s26, %s701_s3 }
 0x1fc   :  { %p614_p3 = pnand %p612_p2, %p609_p1 }
 0x1fe   :  { %617 = shalt.err (!%p614_p3)
}
 0x1ff   :  { %391 = dma.vmem_to_hbm [thread:$0]  %s389_s21, 16, %s701_s3, [#allocation4]  }
 0x200   :  { %622 = dma.done.wait [#allocation4], 16  }
 0x201   :  { %623 = vsyncadd [#allocation4], 4294967280 }
 0x202   :  { %395 = vsyncpa [#allocation3], 1 }
 0x203   :  { %396 = vsyncpa [#allocation6], 1 }
 0x204   :  { %397 = vsyncpa [#allocation4], 1 }

</bundles_post_ra>
